<compile_context>
chip_gen: v6e
topology: v6e:2x2x1
jax: 0.10.0
libtpu: 0.0.40
codegen_flags: <defaults>
</compile_context>

<pallas_src>
import functools

import jax
import jax.numpy as jnp
from jax.experimental import pallas as pl
from jax.experimental.pallas import tpu as pltpu


def _round_up(x, m):
    return (x + m - 1) // m * m


# ------------- single-pass kernel: whole d_in resident (fast path) -------------
def _fused_single_kernel(x_ref, w1_ref, b1_ref, w2_ref, o_ref):
    """grid = (batch tiles [parallel],). Full fused MLP head for one batch tile."""
    h = jnp.dot(x_ref[...], w1_ref[...], preferred_element_type=jnp.float32)
    h = jnp.maximum(h + b1_ref[...], 0.0)                 # bias + ReLU in f32
    logits = jnp.dot(h.astype(w2_ref.dtype), w2_ref[...],
                     preferred_element_type=jnp.float32)
    # classifier bias is frozen zeros in the module -> no-op add, omitted.
    o_ref[...] = logits.astype(o_ref.dtype)


# ------------- reduction kernel: d_in tiled along an inner grid axis -------------
def _fused_reduce_kernel(x_ref, w1_ref, b1_ref, w2_ref, o_ref, acc_ref):
    """grid = (batch tiles [parallel], d_in tiles [arbitrary/reduction])."""
    k = pl.program_id(1)

    @pl.when(k == 0)
    def _init():
        acc_ref[...] = jnp.zeros_like(acc_ref)

    # Partial K-reduction of the feature-extractor matmul; f32 accumulation.
    acc_ref[...] += jnp.dot(x_ref[...], w1_ref[...],
                            preferred_element_type=jnp.float32)

    @pl.when(k == pl.num_programs(1) - 1)
    def _finalize():
        h = jnp.maximum(acc_ref[...] + b1_ref[...], 0.0)   # bias + ReLU in f32
        logits = jnp.dot(h.astype(w2_ref.dtype), w2_ref[...],
                         preferred_element_type=jnp.float32)
        o_ref[...] = logits.astype(o_ref.dtype)


@functools.partial(jax.jit, static_argnames=("compute_dtype",))
def base_model_forward(x_nchw, w1, b1, w2, compute_dtype=jnp.float32):
    """x_nchw: [B, C, H, W] float32. Returns logits [B, num_labels] float32.

    w1: [d_in, feature_dim]   (transposed vs torch [out, in])
    b1: [feature_dim]
    w2: [feature_dim, num_labels]
    """
    B = x_nchw.shape[0]
    x_flat = x_nchw.reshape(B, -1)           # same element order as nn.Flatten on NCHW
    d_in = x_flat.shape[1]
    feat = w1.shape[1]
    nlab = w2.shape[1]

    itemsize = jnp.dtype(compute_dtype).itemsize

    # ---- tiling parameters (all static under jit) ---------------------------
    # M (batch): multiple of 16 covers both f32 (8) and bf16 (16) sublane packing.
    TM = min(128, _round_up(B, 16))
    # Lane-dense padded widths (unmasked vector stores / clean MXU layout).
    Fpad = _round_up(feat, 128)
    Npad = _round_up(nlab, 128)
    Mpad = _round_up(B, TM)
    Kpad128 = _round_up(d_in, 128)

    # Fast single-pass path if the resident working set fits comfortably in VMEM
    # (x-tile + W1 double-buffered, W2 / b1 / out-tile single-buffered, headroom).
    single_bytes = (2 * (TM * Kpad128 + Kpad128 * Fpad) * itemsize
                    + Fpad * Npad * itemsize + Fpad * 4 + 2 * TM * Npad * 4)
    use_single = single_bytes <= 24 * 1024 * 1024

    if use_single:
        TK = Kpad128
    else:
        TK = min(Kpad128, 512)
    Kpad = _round_up(d_in, TK)

    # ---- zero-pad + cast (padding contributes exactly zero to the result) ----
    xp = jnp.zeros((Mpad, Kpad), compute_dtype).at[:B, :d_in].set(
        x_flat.astype(compute_dtype))
    w1p = jnp.zeros((Kpad, Fpad), compute_dtype).at[:d_in, :feat].set(
        w1.astype(compute_dtype))
    b1p = jnp.zeros((1, Fpad), jnp.float32).at[:, :feat].set(
        b1.reshape(1, feat).astype(jnp.float32))
    w2p = jnp.zeros((Fpad, Npad), compute_dtype).at[:feat, :nlab].set(
        w2.astype(compute_dtype))

    cost = pl.CostEstimate(
        flops=2 * Mpad * Kpad * Fpad + 2 * Mpad * Fpad * Npad,
        transcendentals=0,
        bytes_accessed=(Mpad * Kpad + Kpad * Fpad + Fpad * Npad) * itemsize
                       + Fpad * 4 + Mpad * Npad * 4,
    )
    cparams = pltpu.CompilerParams(
        dimension_semantics=("parallel",) if use_single else ("parallel", "arbitrary"),
        vmem_limit_bytes=32 * 1024 * 1024,
    )

    if use_single:
        out = pl.pallas_call(
            _fused_single_kernel,
            out_shape=jax.ShapeDtypeStruct((Mpad, Npad), jnp.float32),
            grid_spec=pltpu.PrefetchScalarGridSpec(
                num_scalar_prefetch=0,
                grid=(Mpad // TM,),
                in_specs=[
                    pl.BlockSpec((TM, Kpad), lambda i: (i, 0)),       # x tile
                    pl.BlockSpec((Kpad, Fpad), lambda i: (0, 0)),     # W1 (resident)
                    pl.BlockSpec((1, Fpad), lambda i: (0, 0)),        # b1 (resident)
                    pl.BlockSpec((Fpad, Npad), lambda i: (0, 0)),     # W2 (resident)
                ],
                out_specs=pl.BlockSpec((TM, Npad), lambda i: (i, 0)),
            ),
            compiler_params=cparams,
            cost_estimate=cost,
        )(xp, w1p, b1p, w2p)
    else:
        out = pl.pallas_call(
            _fused_reduce_kernel,
            out_shape=jax.ShapeDtypeStruct((Mpad, Npad), jnp.float32),
            grid_spec=pltpu.PrefetchScalarGridSpec(
                num_scalar_prefetch=0,
                grid=(Mpad // TM, Kpad // TK),
                in_specs=[
                    pl.BlockSpec((TM, TK), lambda i, k: (i, k)),      # x tile
                    pl.BlockSpec((TK, Fpad), lambda i, k: (k, 0)),    # W1 K-tile
                    pl.BlockSpec((1, Fpad), lambda i, k: (0, 0)),     # b1 (resident)
                    pl.BlockSpec((Fpad, Npad), lambda i, k: (0, 0)),  # W2 (resident)
                ],
                out_specs=pl.BlockSpec((TM, Npad), lambda i, k: (i, 0)),
                scratch_shapes=[pltpu.VMEM((TM, Fpad), jnp.float32)],  # f32 accumulator
            ),
            compiler_params=cparams,
            cost_estimate=cost,
        )(xp, w1p, b1p, w2p)

    return out[:B, :nlab]


def init_params(key, c, h, w, feature_dim, num_labels):
    """Deterministic init mimicking PyTorch nn.Linear defaults (U[-1/sqrt(fan_in), +])."""
    d_in = c * h * w
    k1, k2, k3 = jax.random.split(key, 3)
    bound1 = 1.0 / jnp.sqrt(d_in)
    # stored as [in, out] (transposed vs torch's [out, in]) for x @ W
    w1 = jax.random.uniform(k1, (d_in, feature_dim), jnp.float32, -bound1, bound1)
    b1 = jax.random.uniform(k2, (feature_dim,), jnp.float32, -bound1, bound1)
    bound2 = 1.0 / jnp.sqrt(feature_dim)
    w2 = jax.random.uniform(k3, (feature_dim, num_labels), jnp.float32, -bound2, bound2)
    # self.linear.bias = nn.Parameter(torch.zeros(num_labels), requires_grad=False)
    # -> frozen zeros, dropped from the kernel entirely.
    return w1, b1, w2


if __name__ == "__main__":
    # Small shapes: batch=2, channels=4, spatial=16x16, feature_dim=32, num_labels=8
    B, C, H, W = 2, 4, 16, 16
    FEATURE_DIM, NUM_LABELS = 32, 8

    key = jax.random.PRNGKey(0)
    kx, kp = jax.random.split(key)
    x = jax.random.normal(kx, (B, C, H, W), jnp.float32)
    w1, b1, w2 = init_params(kp, C, H, W, FEATURE_DIM, NUM_LABELS)

    # Pure-JAX f32 reference (classifier bias is frozen zeros -> omitted).
    x_flat = x.reshape(B, -1)
    ref = jnp.maximum(x_flat @ w1 + b1[None, :], 0.0) @ w2

    # f32 path: tight check.
    out_f32 = base_model_forward(x, w1, b1, w2, compute_dtype=jnp.float32)
    jax.block_until_ready(out_f32)
    assert out_f32.shape == (B, NUM_LABELS)
    assert jnp.allclose(out_f32, ref, atol=1e-4, rtol=1e-4)

    # bf16 MXU path (v6e/v7x throughput, f32 accumulation): loose check.
    out_bf16 = base_model_forward(x, w1, b1, w2, compute_dtype=jnp.bfloat16)
    jax.block_until_ready(out_bf16)
    assert out_bf16.shape == (B, NUM_LABELS)
    assert jnp.allclose(out_bf16, ref, atol=3e-2, rtol=3e-2)

    # TODO(synk): calibrator.calibrate(x) is None by default in the module; not modeled.
    print("KERNEL_OK")
</pallas_src>

<mosaic_0001>
module attributes {stable_mosaic.version = 11 : i64} {
  func.func @_fused_single_kernel(%arg0: i32, %arg1: memref<16x1024xf32, #tpu.memory_space<vmem>>, %arg2: memref<1024x128xf32, #tpu.memory_space<vmem>>, %arg3: memref<1x128xf32, #tpu.memory_space<vmem>>, %arg4: memref<128x128xf32, #tpu.memory_space<vmem>>, %arg5: memref<16x128xf32, #tpu.memory_space<vmem>>) attributes {dimension_semantics = [#tpu.dimension_semantics<parallel>], iteration_bounds = array<i64: 1>, scalar_prefetch = 0 : i64, scratch_operands = 0 : i64, tpu.core_type = #tpu.core_type<tc>, window_params = [{transform_indices = @transform_0, window_bounds = array<i64: 16, 1024>}, {pipeline_mode = #tpu.pipeline_mode<synchronous>, transform_indices = @transform_1, window_bounds = array<i64: 1024, 128>}, {pipeline_mode = #tpu.pipeline_mode<synchronous>, transform_indices = @transform_2, window_bounds = array<i64: 1, 128>}, {pipeline_mode = #tpu.pipeline_mode<synchronous>, transform_indices = @transform_3, window_bounds = array<i64: 128, 128>}, {transform_indices = @transform_4, window_bounds = array<i64: 16, 128>}]} {
    %c0 = arith.constant 0 : index
    %c0_0 = arith.constant 0 : index
    %0 = vector.load %arg1[%c0, %c0_0] : memref<16x1024xf32, #tpu.memory_space<vmem>>, vector<16x1024xf32>
    %c0_1 = arith.constant 0 : index
    %c0_2 = arith.constant 0 : index
    %1 = vector.load %arg2[%c0_1, %c0_2] : memref<1024x128xf32, #tpu.memory_space<vmem>>, vector<1024x128xf32>
    %cst = arith.constant dense<0.000000e+00> : vector<16x128xf32>
    %2 = tpu.matmul %0, %1, %cst {dimension_numbers = #tpu.dot_dimension_numbers<[1], [0], [0], [1], [0, 0, 1, 1], [], []>} : vector<16x1024xf32>, vector<1024x128xf32>, vector<16x128xf32> -> vector<16x128xf32>
    %c0_3 = arith.constant 0 : index
    %c0_4 = arith.constant 0 : index
    %3 = vector.load %arg3[%c0_3, %c0_4] : memref<1x128xf32, #tpu.memory_space<vmem>>, vector<1x128xf32>
    %4 = vector.broadcast %3 : vector<1x128xf32> to vector<16x128xf32>
    %5 = arith.addf %2, %4 : vector<16x128xf32>
    %cst_5 = arith.constant 0.000000e+00 : f32
    %6 = vector.broadcast %cst_5 : f32 to vector<16x128xf32>
    %7 = arith.maximumf %5, %6 : vector<16x128xf32>
    %c0_6 = arith.constant 0 : index
    %c0_7 = arith.constant 0 : index
    %8 = vector.load %arg4[%c0_6, %c0_7] : memref<128x128xf32, #tpu.memory_space<vmem>>, vector<128x128xf32>
    %cst_8 = arith.constant dense<0.000000e+00> : vector<16x128xf32>
    %9 = tpu.matmul %7, %8, %cst_8 {dimension_numbers = #tpu.dot_dimension_numbers<[1], [0], [0], [1], [0, 0, 1, 1], [], []>} : vector<16x128xf32>, vector<128x128xf32>, vector<16x128xf32> -> vector<16x128xf32>
    %c0_9 = arith.constant 0 : index
    %c0_10 = arith.constant 0 : index
    %10 = vector.load %arg5[%c0_9, %c0_10] : memref<16x128xf32, #tpu.memory_space<vmem>>, vector<16x128xf32>
    tpu.vector_store %arg5[%c0_9, %c0_10], %9 {strides = array<i32>} : memref<16x128xf32, #tpu.memory_space<vmem>>, vector<16x128xf32>,
    return
  }
  func.func @transform_0(%arg0: i32) -> (i32, i32) {
    %c0_i32 = arith.constant 0 : i32
    %c0_i32_0 = arith.constant 0 : i32
    return %arg0, %c0_i32 : i32, i32
  }
  func.func @transform_1(%arg0: i32) -> (i32, i32) {
    %c0_i32 = arith.constant 0 : i32
    %c0_i32_0 = arith.constant 0 : i32
    %c0_i32_1 = arith.constant 0 : i32
    return %c0_i32, %c0_i32_0 : i32, i32
  }
  func.func @transform_2(%arg0: i32) -> (i32, i32) {
    %c0_i32 = arith.constant 0 : i32
    %c0_i32_0 = arith.constant 0 : i32
    %c0_i32_1 = arith.constant 0 : i32
    return %c0_i32, %c0_i32_0 : i32, i32
  }
  func.func @transform_3(%arg0: i32) -> (i32, i32) {
    %c0_i32 = arith.constant 0 : i32
    %c0_i32_0 = arith.constant 0 : i32
    %c0_i32_1 = arith.constant 0 : i32
    return %c0_i32, %c0_i32_0 : i32, i32
  }
  func.func @transform_4(%arg0: i32) -> (i32, i32) {
    %c0_i32 = arith.constant 0 : i32
    %c0_i32_0 = arith.constant 0 : i32
    return %arg0, %c0_i32 : i32, i32
  }
}

</mosaic_0001>

<bundles_post_ra>
// kernel: base_model_forward.1
= control target key start
LH: loop header
LB: loop body
LE: loop exit
PB: predicated region body
PF: predicated region fallthrough
CT: control target
= control target key end

     0   :  { %s1287_s1 = inlined_call_operand.vmem [shape: f32[1024,128], index: 1, kind: input, shape index: {}]   ;;  %s1288_s0 = inlined_call_operand.vmem [shape: f32[16,1024], index: 0, kind: input, shape index: {}]   ;;  %s1289_s3 = inlined_call_operand.vmem [shape: f32[128,128], index: 3, kind: input, shape index: {}]   ;;  %s1290_s2 = inlined_call_operand.vmem [shape: f32[1,128], index: 2, kind: input, shape index: {}]   ;;  %s1291_s4 = inlined_call_operand.vmem [shape: f32[16,128], index: 4, kind: output, shape index: {}]  }
   0x1   :  { %v64_v0 = vld [vmem:[%s1287_s1 + $0xf8] sm:$0xff]  ;;  %v63_v4 = vld [vmem:[%s1287_s1 + $0xf0] sm:$0xff]  ;;  %v62_v8 = vld [vmem:[%s1287_s1 + $0xe8] sm:$0xff] }
   0x2   :  { %v96_v1 = vld [vmem:[%s1287_s1 + $0x1f8] sm:$0xff]  ;;  %568 = vmatprep.subr.mxu0 %v64_v0  ;;  %v95_v5 = vld [vmem:[%s1287_s1 + $0x1f0] sm:$0xff]  ;;  %v94_v9 = vld [vmem:[%s1287_s1 + $0x1e8] sm:$0xff] }
   0x3   :  { %v48_v2 = vld [vmem:[%s1287_s1 + $0x78] sm:$0xff]  ;;  %606 = vmatprep.subr.mxu1 %v96_v1  ;;  %v47_v6 = vld [vmem:[%s1287_s1 + $0x70] sm:$0xff]  ;;  %v46_v10 = vld [vmem:[%s1287_s1 + $0x68] sm:$0xff] }
   0x4   :  { %v80_v3 = vld [vmem:[%s1287_s1 + $0x178] sm:$0xff]  ;;  %569 = vmatpush3.msra.mxu0 %v48_v2  ;;  %v79_v7 = vld [vmem:[%s1287_s1 + $0x170] sm:$0xff]  ;;  %v78_v11 = vld [vmem:[%s1287_s1 + $0x168] sm:$0xff] }
   0x5   :  { %607 = vmatpush3.msra.mxu1 %v80_v3  ;;  %570 = vmatprep.subr.mxu0 %v63_v4  ;;  %v61_v12 = vld [vmem:[%s1287_s1 + $0xe0] sm:$0xff]  ;;  %v60_v16 = vld [vmem:[%s1287_s1 + $0xd8] sm:$0xff]  ;;  %v59_v20 = vld [vmem:[%s1287_s1 + $0xd0] sm:$0xff] }
   0x6   :  { %608 = vmatprep.subr.mxu1 %v95_v5  ;;  %571 = vmatpush3.msra.mxu0 %v47_v6  ;;  %v93_v13 = vld [vmem:[%s1287_s1 + $0x1e0] sm:$0xff]  ;;  %v92_v17 = vld [vmem:[%s1287_s1 + $0x1d8] sm:$0xff]  ;;  %v91_v21 = vld [vmem:[%s1287_s1 + $0x1d0] sm:$0xff] }
   0x7   :  { %609 = vmatpush3.msra.mxu1 %v79_v7  ;;  %572 = vmatprep.subr.mxu0 %v62_v8  ;;  %v45_v14 = vld [vmem:[%s1287_s1 + $0x60] sm:$0xff]  ;;  %v44_v18 = vld [vmem:[%s1287_s1 + $0x58] sm:$0xff]  ;;  %v43_v22 = vld [vmem:[%s1287_s1 + $0x50] sm:$0xff] }
   0x8   :  { %610 = vmatprep.subr.mxu1 %v94_v9  ;;  %v77_v15 = vld [vmem:[%s1287_s1 + $0x160] sm:$0xff]  ;;  %573 = vmatpush3.msra.mxu0 %v46_v10  ;;  %v76_v19 = vld [vmem:[%s1287_s1 + $0x158] sm:$0xff]  ;;  %v75_v23 = vld [vmem:[%s1287_s1 + $0x150] sm:$0xff] }
   0x9   :  { %611 = vmatpush3.msra.mxu1 %v78_v11  ;;  %574 = vmatprep.subr.mxu0 %v61_v12  ;;  %v58_v24 = vld [vmem:[%s1287_s1 + $0xc8] sm:$0xff]  ;;  %v57_v28 = vld [vmem:[%s1287_s1 + $0xc0] sm:$0xff]  ;;  %v56_v32 = vld [vmem:[%s1287_s1 + $0xb8] sm:$0xff] }
   0xa   :  { %612 = vmatprep.subr.mxu1 %v93_v13  ;;  %575 = vmatpush3.msra.mxu0 %v45_v14  ;;  %v90_v25 = vld [vmem:[%s1287_s1 + $0x1c8] sm:$0xff]  ;;  %v89_v29 = vld [vmem:[%s1287_s1 + $0x1c0] sm:$0xff]  ;;  %v88_v33 = vld [vmem:[%s1287_s1 + $0x1b8] sm:$0xff] }
   0xb   :  { %613 = vmatpush3.msra.mxu1 %v77_v15  ;;  %576 = vmatprep.subr.mxu0 %v60_v16  ;;  %v42_v26 = vld [vmem:[%s1287_s1 + $0x48] sm:$0xff]  ;;  %v41_v30 = vld [vmem:[%s1287_s1 + $0x40] sm:$0xff]  ;;  %v40_v34 = vld [vmem:[%s1287_s1 + $0x38] sm:$0xff] }
   0xc   :  { %614 = vmatprep.subr.mxu1 %v92_v17  ;;  %577 = vmatpush3.msra.mxu0 %v44_v18  ;;  %v74_v27 = vld [vmem:[%s1287_s1 + $0x148] sm:$0xff]  ;;  %v73_v31 = vld [vmem:[%s1287_s1 + $0x140] sm:$0xff]  ;;  %v72_v35 = vld [vmem:[%s1287_s1 + $0x138] sm:$0xff] }
   0xd   :  { %615 = vmatpush3.msra.mxu1 %v76_v19  ;;  %578 = vmatprep.subr.mxu0 %v59_v20  ;;  %v55_v36 = vld [vmem:[%s1287_s1 + $0xb0] sm:$0xff]  ;;  %v54_v40 = vld [vmem:[%s1287_s1 + $0xa8] sm:$0xff]  ;;  %v53_v44 = vld [vmem:[%s1287_s1 + $0xa0] sm:$0xff] }
   0xe   :  { %616 = vmatprep.subr.mxu1 %v91_v21  ;;  %579 = vmatpush3.msra.mxu0 %v43_v22  ;;  %v87_v37 = vld [vmem:[%s1287_s1 + $0x1b0] sm:$0xff]  ;;  %v86_v41 = vld [vmem:[%s1287_s1 + $0x1a8] sm:$0xff]  ;;  %v85_v45 = vld [vmem:[%s1287_s1 + $0x1a0] sm:$0xff] }
   0xf   :  { %617 = vmatpush3.msra.mxu1 %v75_v23  ;;  %580 = vmatprep.subr.mxu0 %v58_v24  ;;  %v39_v38 = vld [vmem:[%s1287_s1 + $0x30] sm:$0xff]  ;;  %v38_v42 = vld [vmem:[%s1287_s1 + $0x28] sm:$0xff]  ;;  %v37_v46 = vld [vmem:[%s1287_s1 + $0x20] sm:$0xff] }
  0x10   :  { %618 = vmatprep.subr.mxu1 %v90_v25  ;;  %581 = vmatpush3.msra.mxu0 %v42_v26  ;;  %v71_v39 = vld [vmem:[%s1287_s1 + $0x130] sm:$0xff]  ;;  %v70_v43 = vld [vmem:[%s1287_s1 + $0x128] sm:$0xff]  ;;  %v69_v47 = vld [vmem:[%s1287_s1 + $0x120] sm:$0xff] }
  0x11   :  { %619 = vmatpush3.msra.mxu1 %v74_v27  ;;  %582 = vmatprep.subr.mxu0 %v57_v28  ;;  %v52_v48 = vld [vmem:[%s1287_s1 + $0x98] sm:$0xff]  ;;  %v51_v52 = vld [vmem:[%s1287_s1 + $0x90] sm:$0xff]  ;;  %v50_v56 = vld [vmem:[%s1287_s1 + $0x88] sm:$0xff] }
  0x12   :  { %620 = vmatprep.subr.mxu1 %v89_v29  ;;  %583 = vmatpush3.msra.mxu0 %v41_v30  ;;  %v84_v49 = vld [vmem:[%s1287_s1 + $0x198] sm:$0xff]  ;;  %v83_v53 = vld [vmem:[%s1287_s1 + $0x190] sm:$0xff]  ;;  %v82_v57 = vld [vmem:[%s1287_s1 + $0x188] sm:$0xff] }
  0x13   :  { %621 = vmatpush3.msra.mxu1 %v73_v31  ;;  %584 = vmatprep.subr.mxu0 %v56_v32  ;;  %v36_v50 = vld [vmem:[%s1287_s1 + $0x18] sm:$0xff]  ;;  %v35_v54 = vld [vmem:[%s1287_s1 + $0x10] sm:$0xff]  ;;  %v34_v58 = vld [vmem:[%s1287_s1 + $0x8] sm:$0xff] }
  0x14   :  { %622 = vmatprep.subr.mxu1 %v88_v33  ;;  %585 = vmatpush3.msra.mxu0 %v40_v34  ;;  %v68_v51 = vld [vmem:[%s1287_s1 + $0x118] sm:$0xff]  ;;  %v67_v55 = vld [vmem:[%s1287_s1 + $0x110] sm:$0xff]  ;;  %v66_v59 = vld [vmem:[%s1287_s1 + $0x108] sm:$0xff] }
  0x15   :  { %623 = vmatpush3.msra.mxu1 %v72_v35  ;;  %586 = vmatprep.subr.mxu0 %v55_v36  ;;  %v49_v60 = vld [vmem:[%s1287_s1 + $0x80] sm:$0xff]  ;;  %v18_v63 = vld [vmem:[%s1288_s0 + $0x8] sm:$0xff]  ;;  %v20_v2 = vld [vmem:[%s1288_s0 + $0x18] sm:$0xff] }
  0x16   :  { %624 = vmatprep.subr.mxu1 %v87_v37  ;;  %587 = vmatpush3.msra.mxu0 %v39_v38  ;;  %v81_v61 = vld [vmem:[%s1287_s1 + $0x180] sm:$0xff]  ;;  %v128_v3 = vld [vmem:[%s1287_s1 + $0x2f8] sm:$0xff]  ;;  %v19_v5 = vld [vmem:[%s1288_s0 + $0x10] sm:$0xff] }
  0x17   :  { %625 = vmatpush3.msra.mxu1 %v71_v39  ;;  %588 = vmatprep.subr.mxu0 %v54_v40  ;;  %v33_v62 = vld [vmem:[%s1287_s1] sm:$0xff]  ;;  %v160_v4 = vld [vmem:[%s1287_s1 + $0x3f8] sm:$0xff]  ;;  %v127_v8 = vld [vmem:[%s1287_s1 + $0x2f0] sm:$0xff] }
  0x18   :  { %626 = vmatprep.subr.mxu1 %v86_v41  ;;  %589 = vmatpush3.msra.mxu0 %v38_v42  ;;  %v65_v0 = vld [vmem:[%s1287_s1 + $0x100] sm:$0xff]  ;;  %v112_v6 = vld [vmem:[%s1287_s1 + $0x278] sm:$0xff]  ;;  %v159_v9 = vld [vmem:[%s1287_s1 + $0x3f0] sm:$0xff] }
  0x19   :  { %627 = vmatpush3.msra.mxu1 %v70_v43  ;;  %590 = vmatprep.subr.mxu0 %v53_v44  ;;  %v17_v1 = vld [vmem:[%s1288_s0] sm:$0xff]  ;;  %v144_v7 = vld [vmem:[%s1287_s1 + $0x378] sm:$0xff]  ;;  %v111_v10 = vld [vmem:[%s1287_s1 + $0x270] sm:$0xff] }
  0x1a   :  { %628 = vmatprep.subr.mxu1 %v85_v45  ;;  %591 = vmatpush3.msra.mxu0 %v37_v46  ;;  %v143_v11 = vld [vmem:[%s1287_s1 + $0x370] sm:$0xff]  ;;  %v126_v12 = vld [vmem:[%s1287_s1 + $0x2e8] sm:$0xff]  ;;  %v125_v16 = vld [vmem:[%s1287_s1 + $0x2e0] sm:$0xff] }
  0x1b   :  { %629 = vmatpush3.msra.mxu1 %v69_v47  ;;  %592 = vmatprep.subr.mxu0 %v52_v48  ;;  %v158_v13 = vld [vmem:[%s1287_s1 + $0x3e8] sm:$0xff]  ;;  %v157_v17 = vld [vmem:[%s1287_s1 + $0x3e0] sm:$0xff]  ;;  %v124_v20 = vld [vmem:[%s1287_s1 + $0x2d8] sm:$0xff] }
  0x1c   :  { %630 = vmatprep.subr.mxu1 %v84_v49  ;;  %593 = vmatpush3.msra.mxu0 %v36_v50  ;;  %v110_v14 = vld [vmem:[%s1287_s1 + $0x268] sm:$0xff]  ;;  %v109_v18 = vld [vmem:[%s1287_s1 + $0x260] sm:$0xff]  ;;  %v156_v21 = vld [vmem:[%s1287_s1 + $0x3d8] sm:$0xff] }
  0x1d   :  { %631 = vmatpush3.msra.mxu1 %v68_v51  ;;  %594 = vmatprep.subr.mxu0 %v51_v52  ;;  %v142_v15 = vld [vmem:[%s1287_s1 + $0x368] sm:$0xff]  ;;  %v141_v19 = vld [vmem:[%s1287_s1 + $0x360] sm:$0xff]  ;;  %v108_v22 = vld [vmem:[%s1287_s1 + $0x258] sm:$0xff] }
  0x1e   :  { %632 = vmatprep.subr.mxu1 %v83_v53  ;;  %595 = vmatpush3.msra.mxu0 %v35_v54  ;;  %v140_v23 = vld [vmem:[%s1287_s1 + $0x358] sm:$0xff]  ;;  %v123_v24 = vld [vmem:[%s1287_s1 + $0x2d0] sm:$0xff]  ;;  %v122_v28 = vld [vmem:[%s1287_s1 + $0x2c8] sm:$0xff] }
  0x1f   :  { %633 = vmatpush3.msra.mxu1 %v67_v55  ;;  %596 = vmatprep.subr.mxu0 %v50_v56  ;;  %v155_v25 = vld [vmem:[%s1287_s1 + $0x3d0] sm:$0xff]  ;;  %v154_v29 = vld [vmem:[%s1287_s1 + $0x3c8] sm:$0xff]  ;;  %v121_v32 = vld [vmem:[%s1287_s1 + $0x2c0] sm:$0xff] }
  0x20   :  { %634 = vmatprep.subr.mxu1 %v82_v57  ;;  %597 = vmatpush3.msra.mxu0 %v34_v58  ;;  %v107_v26 = vld [vmem:[%s1287_s1 + $0x250] sm:$0xff]  ;;  %v106_v30 = vld [vmem:[%s1287_s1 + $0x248] sm:$0xff]  ;;  %v153_v33 = vld [vmem:[%s1287_s1 + $0x3c0] sm:$0xff] }
  0x21   :  { %635 = vmatpush3.msra.mxu1 %v66_v59  ;;  %598 = vmatprep.subr.mxu0 %v49_v60  ;;  %v139_v27 = vld [vmem:[%s1287_s1 + $0x350] sm:$0xff]  ;;  %v138_v31 = vld [vmem:[%s1287_s1 + $0x348] sm:$0xff]  ;;  %v105_v34 = vld [vmem:[%s1287_s1 + $0x240] sm:$0xff] }
  0x22   :  { %636 = vmatprep.subr.mxu1 %v81_v61  ;;  %599 = vmatpush3.msra.mxu0 %v33_v62  ;;  %v137_v35 = vld [vmem:[%s1287_s1 + $0x340] sm:$0xff]  ;;  %v120_v36 = vld [vmem:[%s1287_s1 + $0x2b8] sm:$0xff]  ;;  %v119_v40 = vld [vmem:[%s1287_s1 + $0x2b0] sm:$0xff] }
  0x23   :  { %232 = vmatprep.mubr.f32.mxu0 %v18_v63  ;;  %637 = vmatpush3.msra.mxu1 %v65_v0  ;;  %v152_v37 = vld [vmem:[%s1287_s1 + $0x3b8] sm:$0xff]  ;;  %v151_v41 = vld [vmem:[%s1287_s1 + $0x3b0] sm:$0xff]  ;;  %v118_v44 = vld [vmem:[%s1287_s1 + $0x2a8] sm:$0xff] }
  0x24   :  { %233 = vmatmul.mubr.f32.vlgmr.msra.gmra.mxu0 %v17_v1  ;;  %307 = vmatprep.mubr.f32.mxu1 %v20_v2  ;;  %v104_v38 = vld [vmem:[%s1287_s1 + $0x238] sm:$0xff]  ;;  %v103_v42 = vld [vmem:[%s1287_s1 + $0x230] sm:$0xff]  ;;  %v150_v45 = vld [vmem:[%s1287_s1 + $0x3a8] sm:$0xff] }
  0x25   :  { %644 = vmatprep.subr.mxu0 %v128_v3  ;;  %682 = vmatprep.subr.mxu1 %v160_v4  ;;  %v136_v39 = vld [vmem:[%s1287_s1 + $0x338] sm:$0xff]  ;;  %v135_v43 = vld [vmem:[%s1287_s1 + $0x330] sm:$0xff]  ;;  %v102_v46 = vld [vmem:[%s1287_s1 + $0x228] sm:$0xff] }
  0x26   :  { %308 = vmatmul.mubr.f32.vlgmr.msra.gmra.mxu1 %v19_v5  ;;  %645 = vmatpush3.msra.mxu0 %v112_v6  ;;  %v134_v47 = vld [vmem:[%s1287_s1 + $0x328] sm:$0xff]  ;;  %v117_v48 = vld [vmem:[%s1287_s1 + $0x2a0] sm:$0xff]  ;;  %v116_v52 = vld [vmem:[%s1287_s1 + $0x298] sm:$0xff] }
  0x27   :  { %683 = vmatpush3.msra.mxu1 %v144_v7  ;;  %646 = vmatprep.subr.mxu0 %v127_v8  ;;  %v149_v49 = vld [vmem:[%s1287_s1 + $0x3a0] sm:$0xff]  ;;  %v148_v53 = vld [vmem:[%s1287_s1 + $0x398] sm:$0xff]  ;;  %v26_v54 = vld [vmem:[%s1288_s0 + $0x48] sm:$0xff] }
  0x28   :  { %684 = vmatprep.subr.mxu1 %v159_v9  ;;  %647 = vmatpush3.msra.mxu0 %v111_v10  ;;  %v101_v50 = vld [vmem:[%s1287_s1 + $0x220] sm:$0xff]  ;;  %v100_v55 = vld [vmem:[%s1287_s1 + $0x218] sm:$0xff]  ;;  %v115_v58 = vld [vmem:[%s1287_s1 + $0x290] sm:$0xff] }
  0x29   :  { %685 = vmatpush3.msra.mxu1 %v143_v11  ;;  %648 = vmatprep.subr.mxu0 %v126_v12  ;;  %v133_v51 = vld [vmem:[%s1287_s1 + $0x320] sm:$0xff]  ;;  %v132_v56 = vld [vmem:[%s1287_s1 + $0x318] sm:$0xff]  ;;  %v147_v59 = vld [vmem:[%s1287_s1 + $0x390] sm:$0xff] }
  0x2a   :  { %686 = vmatprep.subr.mxu1 %v158_v13  ;;  %649 = vmatpush3.msra.mxu0 %v110_v14  ;;  %v25_v57 = vld [vmem:[%s1288_s0 + $0x40] sm:$0xff]  ;;  %v28_v60 = vld [vmem:[%s1288_s0 + $0x58] sm:$0xff]  ;;  %v99_v61 = vld [vmem:[%s1287_s1 + $0x210] sm:$0xff] }
  0x2b   :  { %687 = vmatpush3.msra.mxu1 %v142_v15  ;;  %650 = vmatprep.subr.mxu0 %v125_v16  ;;  %v131_v62 = vld [vmem:[%s1287_s1 + $0x310] sm:$0xff]  ;;  %v114_v63 = vld [vmem:[%s1287_s1 + $0x288] sm:$0xff]  ;;  %v113_v4 = vld [vmem:[%s1287_s1 + $0x280] sm:$0xff] }
  0x2c   :  { %688 = vmatprep.subr.mxu1 %v157_v17  ;;  %651 = vmatpush3.msra.mxu0 %v109_v18  ;;  %v27_v0 = vld [vmem:[%s1288_s0 + $0x50] sm:$0xff]  ;;  %v146_v1 = vld [vmem:[%s1287_s1 + $0x388] sm:$0xff]  ;;  %v145_v5 = vld [vmem:[%s1287_s1 + $0x380] sm:$0xff] }
  0x2d   :  { %689 = vmatpush3.msra.mxu1 %v141_v19  ;;  %652 = vmatprep.subr.mxu0 %v124_v20  ;;  %v98_v2 = vld [vmem:[%s1287_s1 + $0x208] sm:$0xff]  ;;  %v97_v6 = vld [vmem:[%s1287_s1 + $0x200] sm:$0xff]  ;;  %v24_v9 = vld [vmem:[%s1288_s0 + $0x38] sm:$0xff] }
  0x2e   :  { %690 = vmatprep.subr.mxu1 %v156_v21  ;;  %653 = vmatpush3.msra.mxu0 %v108_v22  ;;  %v130_v3 = vld [vmem:[%s1287_s1 + $0x308] sm:$0xff]  ;;  %v129_v8 = vld [vmem:[%s1287_s1 + $0x300] sm:$0xff]  ;;  %v23_v11 = vld [vmem:[%s1288_s0 + $0x30] sm:$0xff] }
  0x2f   :  { %691 = vmatpush3.msra.mxu1 %v140_v23  ;;  %654 = vmatprep.subr.mxu0 %v123_v24  ;;  %v22_v7 = vld [vmem:[%s1288_s0 + $0x28] sm:$0xff]  ;;  %v21_v10 = vld [vmem:[%s1288_s0 + $0x20] sm:$0xff]  ;;  %v32_v13 = vld [vmem:[%s1288_s0 + $0x78] sm:$0xff] }
  0x30   :  { %692 = vmatprep.subr.mxu1 %v155_v25  ;;  %655 = vmatpush3.msra.mxu0 %v107_v26  ;;  %v30_v12 = vld [vmem:[%s1288_s0 + $0x68] sm:$0xff]  ;;  %v29_v14 = vld [vmem:[%s1288_s0 + $0x60] sm:$0xff]  ;;  %v31_v15 = vld [vmem:[%s1288_s0 + $0x70] sm:$0xff] }
  0x31   :  { %693 = vmatpush3.msra.mxu1 %v139_v27  ;;  %656 = vmatprep.subr.mxu0 %v122_v28  ;;  %v485_v16 = vld [vmem:[%s1289_s3 + $0x78] sm:$0xff]  ;;  %v484_v17 = vld [vmem:[%s1289_s3 + $0x70] sm:$0xff]  ;;  %v483_v18 = vld [vmem:[%s1289_s3 + $0x68] sm:$0xff] }
  0x32   :  { %694 = vmatprep.subr.mxu1 %v154_v29  ;;  %657 = vmatpush3.msra.mxu0 %v106_v30  ;;  %v482_v19 = vld [vmem:[%s1289_s3 + $0x60] sm:$0xff]  ;;  %v481_v20 = vld [vmem:[%s1289_s3 + $0x58] sm:$0xff]  ;;  %v480_v21 = vld [vmem:[%s1289_s3 + $0x50] sm:$0xff] }
  0x33   :  { %695 = vmatpush3.msra.mxu1 %v138_v31  ;;  %658 = vmatprep.subr.mxu0 %v121_v32  ;;  %v479_v22 = vld [vmem:[%s1289_s3 + $0x48] sm:$0xff]  ;;  %v478_v23 = vld [vmem:[%s1289_s3 + $0x40] sm:$0xff]  ;;  %v477_v24 = vld [vmem:[%s1289_s3 + $0x38] sm:$0xff] }
  0x34   :  { %696 = vmatprep.subr.mxu1 %v153_v33  ;;  %659 = vmatpush3.msra.mxu0 %v105_v34  ;;  %v476_v25 = vld [vmem:[%s1289_s3 + $0x30] sm:$0xff]  ;;  %v475_v26 = vld [vmem:[%s1289_s3 + $0x28] sm:$0xff]  ;;  %v474_v27 = vld [vmem:[%s1289_s3 + $0x20] sm:$0xff] }
  0x35   :  { %697 = vmatpush3.msra.mxu1 %v137_v35  ;;  %660 = vmatprep.subr.mxu0 %v120_v36  ;;  %v473_v28 = vld [vmem:[%s1289_s3 + $0x18] sm:$0xff]  ;;  %v472_v29 = vld [vmem:[%s1289_s3 + $0x10] sm:$0xff]  ;;  %v471_v30 = vld [vmem:[%s1289_s3 + $0x8] sm:$0xff] }
  0x36   :  { %698 = vmatprep.subr.mxu1 %v152_v37  ;;  %661 = vmatpush3.msra.mxu0 %v104_v38  ;;  %v470_v31 = vld [vmem:[%s1289_s3] sm:$0xff] }
  0x37   :  { %699 = vmatpush3.msra.mxu1 %v136_v39  ;;  %662 = vmatprep.subr.mxu0 %v119_v40  ;;  %v567_v39 = vld [vmem:[%s1290_s2] ss:$0 sm:$0xff] }
  0x38   :  { %700 = vmatprep.subr.mxu1 %v151_v41  ;;  %663 = vmatpush3.msra.mxu0 %v103_v42 }
  0x39   :  { %701 = vmatpush3.msra.mxu1 %v135_v43  ;;  %664 = vmatprep.subr.mxu0 %v118_v44 }
  0x3a   :  { %702 = vmatprep.subr.mxu1 %v150_v45  ;;  %665 = vmatpush3.msra.mxu0 %v102_v46 }
  0x3b   :  { %703 = vmatpush3.msra.mxu1 %v134_v47  ;;  %666 = vmatprep.subr.mxu0 %v117_v48 }
  0x3c   :  { %704 = vmatprep.subr.mxu1 %v149_v49  ;;  %667 = vmatpush3.msra.mxu0 %v101_v50 }
  0x3d   :  { %705 = vmatpush3.msra.mxu1 %v133_v51  ;;  %668 = vmatprep.subr.mxu0 %v116_v52 }
  0x3e   :  { %706 = vmatprep.subr.mxu1 %v148_v53  ;;  %237 = vmatprep.mubr.f32.mxu0 %v26_v54 }
  0x3f   :  { %669 = vmatpush3.msra.mxu0 %v100_v55  ;;  %707 = vmatpush3.msra.mxu1 %v132_v56 }
  0x40   :  { %238 = vmatmul.mubr.f32.gmra.mxu0 %v25_v57  ;;  %670 = vmatprep.subr.mxu0 %v115_v58 }
  0x41   :  { %708 = vmatprep.subr.mxu1 %v147_v59  ;;  %312 = vmatprep.mubr.f32.mxu1 %v28_v60 }
  0x42   :  { %671 = vmatpush3.msra.mxu0 %v99_v61  ;;  %709 = vmatpush3.msra.mxu1 %v131_v62 }
  0x43   :  { %672 = vmatprep.subr.mxu0 %v114_v63  ;;  %313 = vmatmul.mubr.f32.gmra.mxu1 %v27_v0 }
  0x44   :  { %710 = vmatprep.subr.mxu1 %v146_v1  ;;  %673 = vmatpush3.msra.mxu0 %v98_v2 }
  0x45   :  { %711 = vmatpush3.msra.mxu1 %v130_v3  ;;  %674 = vmatprep.subr.mxu0 %v113_v4 }
  0x46   :  { %712 = vmatprep.subr.mxu1 %v145_v5  ;;  %675 = vmatpush3.msra.mxu0 %v97_v6 }
  0x47   :  { %382 = vmatprep.mubr.f32.mxu0 %v22_v7  ;;  %713 = vmatpush3.msra.mxu1 %v129_v8 }
  0x48   :  { %457 = vmatprep.mubr.f32.mxu1 %v24_v9  ;;  %383 = vmatmul.mubr.f32.vlgmr.msra.gmra.mxu0 %v21_v10 }
  0x49   :  { %458 = vmatmul.mubr.f32.vlgmr.msra.gmra.mxu1 %v23_v11  ;;  %387 = vmatprep.mubr.f32.mxu0 %v30_v12 }
  0x4a   :  { %462 = vmatprep.mubr.f32.mxu1 %v32_v13  ;;  %738 = vmatprep.subr.mxu0 %v485_v16 }
  0x4b   :  { %739 = vmatpush3.msra.mxu0 %v485_v16 }
  0x4c   :  { %388 = vmatmul.mubr.f32.gmra.mxu0 %v29_v14  ;;  %740 = vmatprep.subr.mxu0 %v484_v17 }
  0x4d   :  { %463 = vmatmul.mubr.f32.gmra.mxu1 %v31_v15  ;;  %741 = vmatpush3.msra.mxu0 %v484_v17 }
  0x4e   :  { %742 = vmatprep.subr.mxu0 %v483_v18 }
  0x4f   :  { %743 = vmatpush3.msra.mxu0 %v483_v18 }
  0x50   :  { %744 = vmatprep.subr.mxu0 %v482_v19 }
  0x51   :  { %745 = vmatpush3.msra.mxu0 %v482_v19 }
  0x52   :  { %746 = vmatprep.subr.mxu0 %v481_v20 }
  0x53   :  { %747 = vmatpush3.msra.mxu0 %v481_v20 }
  0x54   :  { %748 = vmatprep.subr.mxu0 %v480_v21 }
  0x55   :  { %749 = vmatpush3.msra.mxu0 %v480_v21 }
  0x56   :  { %750 = vmatprep.subr.mxu0 %v479_v22 }
  0x57   :  { %751 = vmatpush3.msra.mxu0 %v479_v22 }
  0x58   :  { %752 = vmatprep.subr.mxu0 %v478_v23 }
  0x59   :  { %753 = vmatpush3.msra.mxu0 %v478_v23 }
  0x5a   :  { %754 = vmatprep.subr.mxu0 %v477_v24 }
  0x5b   :  { %755 = vmatpush3.msra.mxu0 %v477_v24 }
  0x5c   :  { %756 = vmatprep.subr.mxu0 %v476_v25 }
  0x5d   :  { %757 = vmatpush3.msra.mxu0 %v476_v25 }
  0x5e   :  { %758 = vmatprep.subr.mxu0 %v475_v26 }
  0x5f   :  { %759 = vmatpush3.msra.mxu0 %v475_v26 }
  0x60   :  { %760 = vmatprep.subr.mxu0 %v474_v27 }
  0x61   :  { %761 = vmatpush3.msra.mxu0 %v474_v27 }
  0x62   :  { %762 = vmatprep.subr.mxu0 %v473_v28 }
  0x63   :  { %763 = vmatpush3.msra.mxu0 %v473_v28 }
  0x64   :  { %764 = vmatprep.subr.mxu0 %v472_v29 }
  0x65   :  { %765 = vmatpush3.msra.mxu0 %v472_v29 }
  0x66   :  { %766 = vmatprep.subr.mxu0 %v471_v30 }
  0x67   :  { %767 = vmatpush3.msra.mxu0 %v471_v30 }
  0x68   :  { %768 = vmatprep.subr.mxu0 %v470_v31 }
  0x69   :  { %769 = vmatpush3.msra.mxu0 %v470_v31 }
  0xe4   :  { %v600_v32 = vpop.f32.mrf.mxu0 }
  0xe6   :  { %v638_v33 = vpop.f32.mrf.mxu1  ;;  %v601_v34 = vpop.f32.mrf.mxu0 }
  0xe7   :  { %v602_v37 = vadd.f32 %v601_v34, %v600_v32 }
  0xe8   :  { %v639_v36 = vpop.f32.mrf.mxu1 }
  0xe9   :  { %v235_v42 = vadd.f32 %v602_v37, %v567_v39  ;;  %v640_v43 = vadd.f32 %v639_v36, %v638_v33 }
  0xeb   :  { %v310_v49 = vadd.f32 %v640_v43, %v235_v42 }
 0x100   :  { %v603_v35 = vpop.f32.mrf.mxu0 }
 0x102   :  { %v604_v40 = vpop.f32.mrf.mxu0 }
 0x103   :  { %v641_v38 = vpop.f32.mrf.mxu1  ;;  %v605_v44 = vadd.f32 %v604_v40, %v603_v35 }
 0x105   :  { %v642_v41 = vpop.f32.mrf.mxu1  ;;  %v240_v50 = vadd.f32 %v605_v44, %v567_v39 }
 0x106   :  { %v643_v51 = vadd.f32 %v642_v41, %v641_v38 }
 0x108   :  { %v676_v45 = vpop.f32.mrf.mxu0  ;;  %v315_v59 = vadd.f32 %v643_v51, %v240_v50 }
 0x109   :  { %v714_v46 = vpop.f32.mrf.mxu1 }
 0x10a   :  { %v677_v47 = vpop.f32.mrf.mxu0 }
 0x10b   :  { %v715_v48 = vpop.f32.mrf.mxu1  ;;  %v678_v52 = vadd.f32 %v677_v47, %v676_v45 }
 0x10c   :  { %v679_v53 = vpop.f32.mrf.mxu0  ;;  %v716_v56 = vadd.f32 %v715_v48, %v714_v46 }
 0x10d   :  { %v717_v54 = vpop.f32.mrf.mxu1  ;;  %v385_v55 = vadd.f32 %v678_v52, %v310_v49 }
 0x10e   :  { %v680_v57 = vpop.f32.mrf.mxu0 }
 0x10f   :  { %v718_v58 = vpop.f32.mrf.mxu1  ;;  %v460_v60 = vadd.f32 %v716_v56, %v385_v55  ;;  %v681_v61 = vadd.f32 %v680_v57, %v679_v53 }
 0x110   :  { %v719_v0 = vadd.f32 %v718_v58, %v717_v54 }
 0x111   :  { %v468_v62 = vmax.f32 %v460_v60, 0.0  ;;  %v390_v63 = vadd.f32 %v681_v61, %v315_v59 }
 0x113   :  { %v465_v1 = vadd.f32 %v719_v0, %v390_v63  ;;  %770 = vmatprep.mubr.f32.mxu0 %v468_v62 }
 0x115   :  { %v469_v2 = vmax.f32 %v465_v1, 0.0 }
 0x117   :  { %771 = vmatmul.mubr.f32.vlgmr.msra.gmra.mxu0 %v469_v2 }
 0x1d7   :  { %v772_v3 = vpop.f32.mrf.mxu0 }
 0x1d8   :  { %562 = vst [vmem:[%s1291_s4 + $0x8] sm:$0xff] %v772_v3 }
 0x1d9   :  { %v552_v4 = vpop.f32.mrf.mxu0 }
 0x1da   :  { %561 = vst [vmem:[%s1291_s4] sm:$0xff] %v552_v4 }

</bundles_post_ra>
